<compile_context>
chip_gen: v7x
topology: tpu7x:2x2x1
jax: 0.10.0
libtpu: 0.0.40
codegen_flags: <defaults>
</compile_context>

<pallas_src>
import functools

import numpy as np

import jax
import jax.numpy as jnp
from jax.experimental import pallas as pl
from jax.experimental.pallas import tpu as pltpu

LANE = 128
SUBLANE = 16  # sublane alignment that covers both f32 (8) and bf16 (16) tiles


def _round_up(x, m):
    return (x + m - 1) // m * m


def _choose_tb(B):
    """Batch tile: sublane-aligned, large enough to amortize the ~0.35us grid
    step and fill the MXU M dim, but keep NB = Bp/TB >= 2 when the batch allows
    so both v7x TensorCores get work on the 'parallel' axis."""
    bp = _round_up(B, SUBLANE)
    for tb in (512, 256, 128, 64, 32, 16):
        if 2 * tb <= bp:
            return tb
    return SUBLANE


def multicnn_kernel(x_ref, wc_ref, bc_ref, w1_ref, b1_ref, w2_ref, b2_ref,
                    out_ref):
    """Post-embedding forward for one batch tile: three lane-dense MXU matmuls.

    x_ref  : (TB, LEp)    embedded tokens, row b, lane l*E+e (zero-padded lanes)
    wc_ref : (LEp, Pc)    block-banded conv weight: [l*E+e, f*T+t] = wconv[f,e,l-t]
    bc_ref : (1, Pc) f32  conv bias broadcast over t (torch f-major flatten order)
    w1_ref : (Pc, Hp)     dense1 weight (torch w1.T, zero-padded)
    b1_ref : (1, Hp) f32
    w2_ref : (Hp, Cp)     dense2 weight (torch w2.T, zero-padded)
    b2_ref : (1, Cp) f32
    out_ref: (TB, Cp) f32 (padded classes / batch rows sliced off outside)
    """
    x = x_ref[...]                                            # (TB, LEp)

    # conv1d(valid) + flatten(f-major, t-minor) fused into ONE MXU matmul via
    # the banded weight; f32 accumulation, f32 bias + ReLU epilogue.
    conv = jnp.dot(x, wc_ref[...], preferred_element_type=jnp.float32)
    conv = jnp.maximum(conv + bc_ref[...], 0.0)               # (TB, Pc) f32

    # dense1 + ReLU.
    h = jnp.dot(conv.astype(w1_ref.dtype), w1_ref[...],
                preferred_element_type=jnp.float32) + b1_ref[...]
    h = jnp.maximum(h, 0.0)                                   # (TB, Hp) f32

    # dense2: lane-dense, sublane-aligned (TB, Cp) store (unmasked vst).
    out_ref[...] = (jnp.dot(h.astype(w2_ref.dtype), w2_ref[...],
                            preferred_element_type=jnp.float32)
                    + b2_ref[...])


def make_params(key, vocab_size, E, F, K, L, H, C):
    """Deterministic synthetic parameters shaped like the torch module."""
    ks = jax.random.split(key, 7)
    L_out = L - K + 1
    return dict(
        emb=jax.random.normal(ks[0], (vocab_size, E), jnp.float32) * 0.1,
        wconv=jax.random.normal(ks[1], (F, E, K), jnp.float32) * 0.1,    # Conv1d
        bconv=jax.random.normal(ks[2], (F,), jnp.float32) * 0.1,
        w1=jax.random.normal(ks[3], (H, F * L_out), jnp.float32) * 0.1,  # Linear
        b1=jax.random.normal(ks[4], (H,), jnp.float32) * 0.1,
        w2=jax.random.normal(ks[5], (C, H), jnp.float32) * 0.1,
        b2=jax.random.normal(ks[6], (C,), jnp.float32) * 0.1,
    )


@functools.partial(jax.jit, static_argnames=("K", "compute_dtype"))
def multicnn_forward(tokens, p, K, compute_dtype=jnp.bfloat16):
    B, L = tokens.shape
    E = p['emb'].shape[1]
    F = p['wconv'].shape[0]
    H = p['w1'].shape[0]
    C = p['w2'].shape[0]
    T = L - K + 1

    LE = L * E
    LEp = _round_up(LE, LANE)        # lane-padded conv contraction dim
    Pc = _round_up(F * T, LANE)      # conv/flatten width (torch f*T+t order)
    Hp = _round_up(H, LANE)
    Cp = _round_up(C, LANE)

    TB = _choose_tb(B)
    Bp = _round_up(B, TB)            # batch padded to a multiple of the tile
    NB = Bp // TB

    # ---- glue (plain JAX): embedding gather + lane-dense activation slab ----
    tok = jnp.pad(tokens, ((0, Bp - B), (0, 0)))               # padded rows dropped later
    xe = jnp.take(p['emb'], tok, axis=0).reshape(Bp, LE)       # (Bp, L*E)
    x = jnp.pad(xe, ((0, 0), (0, LEp - LE))).astype(compute_dtype)

    # Block-banded conv weight: one matmul computes conv1d(valid) AND the torch
    # (f-major, t-minor) flatten.  wc[l*E+e, f*T+t] = wconv[f, e, l-t], 0<=l-t<K.
    l_idx = jnp.arange(L)[:, None]
    t_idx = jnp.arange(T)[None, :]
    k_idx = l_idx - t_idx                                      # (L, T)
    valid = (k_idx >= 0) & (k_idx < K)
    wg = p['wconv'][:, :, jnp.clip(k_idx, 0, K - 1)]           # (F, E, L, T)
    wg = jnp.where(valid[None, None], wg, 0.0)
    wc = jnp.transpose(wg, (2, 1, 0, 3)).reshape(LE, F * T)    # (L*E, F*T)
    wc = jnp.pad(wc, ((0, LEp - LE), (0, Pc - F * T))).astype(compute_dtype)
    bc = jnp.pad(jnp.repeat(p['bconv'], T),
                 (0, Pc - F * T)).reshape(1, Pc).astype(jnp.float32)

    # dense1 / dense2: torch flat order is already f*T+t, so just transpose+pad.
    w1 = jnp.pad(p['w1'].T, ((0, Pc - F * T), (0, Hp - H))).astype(compute_dtype)
    b1 = jnp.pad(p['b1'], (0, Hp - H)).reshape(1, Hp).astype(jnp.float32)
    w2 = jnp.pad(p['w2'].T, ((0, Hp - H), (0, Cp - C))).astype(compute_dtype)
    b2 = jnp.pad(p['b2'], (0, Cp - C)).reshape(1, Cp).astype(jnp.float32)

    itm = np.dtype(compute_dtype).itemsize
    weight_bytes = ((wc.size + w1.size + w2.size) * itm
                    + (bc.size + b1.size + b2.size) * 4)
    # Double-buffered activation/out blocks + (double-buffered) weights + live
    # f32 intermediates; keep headroom and stay well under v7x's 64 MiB VMEM.
    vmem_bytes = (2 * TB * LEp * itm + 2 * TB * Cp * 4
                  + 2 * weight_bytes
                  + TB * (Pc + Hp + Cp) * 4)
    vmem_limit = int(min(max(2 * vmem_bytes, 32 << 20), 48 << 20))

    cost = pl.CostEstimate(
        flops=int(2 * Bp * (LEp * Pc + Pc * Hp + Hp * Cp)),
        transcendentals=0,
        bytes_accessed=int(Bp * LEp * itm + Bp * Cp * 4 + weight_bytes),
    )

    out = pl.pallas_call(
        multicnn_kernel,
        out_shape=jax.ShapeDtypeStruct((Bp, Cp), jnp.float32),
        grid=(NB,),
        in_specs=[
            pl.BlockSpec((TB, LEp), lambda i: (i, 0)),     # streamed activations
            pl.BlockSpec((LEp, Pc), lambda i: (0, 0)),     # VMEM-resident weights
            pl.BlockSpec((1, Pc), lambda i: (0, 0)),
            pl.BlockSpec((Pc, Hp), lambda i: (0, 0)),
            pl.BlockSpec((1, Hp), lambda i: (0, 0)),
            pl.BlockSpec((Hp, Cp), lambda i: (0, 0)),
            pl.BlockSpec((1, Cp), lambda i: (0, 0)),
        ],
        out_specs=pl.BlockSpec((TB, Cp), lambda i: (i, 0)),
        compiler_params=pltpu.CompilerParams(
            dimension_semantics=("parallel",),
            vmem_limit_bytes=vmem_limit),
        cost_estimate=cost,
    )(x, wc, bc, w1, b1, w2, b2)

    # Slice off padded batch rows and padded class lanes.
    return out[:B, :C]


def multicnn_ref(tokens, p, K):
    """Pure-JAX reference reproducing the torch forward exactly."""
    xe = jnp.take(p['emb'], tokens, axis=0)          # (B, L, E)
    x = jnp.transpose(xe, (0, 2, 1))                 # (B, E, L)  (torch permute)
    L = x.shape[2]
    L_out = L - K + 1
    conv = jnp.stack(
        [jnp.einsum('bek,fek->bf', x[:, :, t:t + K], p['wconv'])
         for t in range(L_out)], axis=2) + p['bconv'][None, :, None]  # (B,F,T)
    conv = jnp.maximum(conv, 0.0)
    flat = conv.reshape(x.shape[0], -1)              # (B, F*T), (f, t) order
    h = jnp.maximum(flat @ p['w1'].T + p['b1'], 0.0)
    return h @ p['w2'].T + p['b2']


if __name__ == "__main__":
    # Small shapes consistent with the module's forward.
    B, L = 2, 16            # batch, input_length (sequence of token ids)
    vocab_size = 32
    E = 16                  # embedding_dim
    F = 8                   # num_filters
    K = 3                   # kernel_size
    H = 32                  # hidden_size
    C = 4                   # num_classes

    key = jax.random.PRNGKey(0)
    k_tok, k_par = jax.random.split(key)
    tokens = jax.random.randint(k_tok, (B, L), 0, vocab_size, dtype=jnp.int32)
    params = make_params(k_par, vocab_size, E, F, K, L, H, C)

    ref = multicnn_ref(tokens, params, K)

    # f32 matmul-input path (tight tolerance).
    out_f32 = jax.block_until_ready(
        multicnn_forward(tokens, params, K, compute_dtype=jnp.float32))
    assert out_f32.shape == (B, C)
    assert jnp.allclose(out_f32, ref, atol=1e-4, rtol=1e-4), (out_f32, ref)

    # Default bf16 matmul-input path (all generations); f32 accumulation/epilogues.
    out_bf16 = jax.block_until_ready(multicnn_forward(tokens, params, K))
    assert out_bf16.shape == (B, C)
    assert jnp.allclose(out_bf16, ref, atol=5e-2, rtol=5e-2), (out_bf16, ref)

    print("KERNEL_OK")
</pallas_src>

<mosaic_0001>
module attributes {stable_mosaic.version = 11 : i64} {
  func.func @multicnn_kernel(%arg0: i32, %arg1: memref<16x256xf32, #tpu.memory_space<vmem>>, %arg2: memref<256x128xf32, #tpu.memory_space<vmem>>, %arg3: memref<1x128xf32, #tpu.memory_space<vmem>>, %arg4: memref<128x128xf32, #tpu.memory_space<vmem>>, %arg5: memref<1x128xf32, #tpu.memory_space<vmem>>, %arg6: memref<128x128xf32, #tpu.memory_space<vmem>>, %arg7: memref<1x128xf32, #tpu.memory_space<vmem>>, %arg8: memref<16x128xf32, #tpu.memory_space<vmem>>) attributes {dimension_semantics = [#tpu.dimension_semantics<parallel>], iteration_bounds = array<i64: 1>, scalar_prefetch = 0 : i64, scratch_operands = 0 : i64, tpu.core_type = #tpu.core_type<tc>, window_params = [{transform_indices = @transform_0, window_bounds = array<i64: 16, 256>}, {pipeline_mode = #tpu.pipeline_mode<synchronous>, transform_indices = @transform_1, window_bounds = array<i64: 256, 128>}, {pipeline_mode = #tpu.pipeline_mode<synchronous>, transform_indices = @transform_2, window_bounds = array<i64: 1, 128>}, {pipeline_mode = #tpu.pipeline_mode<synchronous>, transform_indices = @transform_3, window_bounds = array<i64: 128, 128>}, {pipeline_mode = #tpu.pipeline_mode<synchronous>, transform_indices = @transform_4, window_bounds = array<i64: 1, 128>}, {pipeline_mode = #tpu.pipeline_mode<synchronous>, transform_indices = @transform_5, window_bounds = array<i64: 128, 128>}, {pipeline_mode = #tpu.pipeline_mode<synchronous>, transform_indices = @transform_6, window_bounds = array<i64: 1, 128>}, {transform_indices = @transform_7, window_bounds = array<i64: 16, 128>}]} {
    %c0 = arith.constant 0 : index
    %c0_0 = arith.constant 0 : index
    %0 = vector.load %arg1[%c0, %c0_0] : memref<16x256xf32, #tpu.memory_space<vmem>>, vector<16x256xf32>
    %c0_1 = arith.constant 0 : index
    %c0_2 = arith.constant 0 : index
    %1 = vector.load %arg2[%c0_1, %c0_2] : memref<256x128xf32, #tpu.memory_space<vmem>>, vector<256x128xf32>
    %cst = arith.constant dense<0.000000e+00> : vector<16x128xf32>
    %2 = tpu.matmul %0, %1, %cst {dimension_numbers = #tpu.dot_dimension_numbers<[1], [0], [0], [1], [0, 0, 1, 1], [], []>} : vector<16x256xf32>, vector<256x128xf32>, vector<16x128xf32> -> vector<16x128xf32>
    %c0_3 = arith.constant 0 : index
    %c0_4 = arith.constant 0 : index
    %3 = vector.load %arg3[%c0_3, %c0_4] : memref<1x128xf32, #tpu.memory_space<vmem>>, vector<1x128xf32>
    %4 = vector.broadcast %3 : vector<1x128xf32> to vector<16x128xf32>
    %5 = arith.addf %2, %4 : vector<16x128xf32>
    %cst_5 = arith.constant 0.000000e+00 : f32
    %6 = vector.broadcast %cst_5 : f32 to vector<16x128xf32>
    %7 = arith.maximumf %5, %6 : vector<16x128xf32>
    %c0_6 = arith.constant 0 : index
    %c0_7 = arith.constant 0 : index
    %8 = vector.load %arg4[%c0_6, %c0_7] : memref<128x128xf32, #tpu.memory_space<vmem>>, vector<128x128xf32>
    %cst_8 = arith.constant dense<0.000000e+00> : vector<16x128xf32>
    %9 = tpu.matmul %7, %8, %cst_8 {dimension_numbers = #tpu.dot_dimension_numbers<[1], [0], [0], [1], [0, 0, 1, 1], [], []>} : vector<16x128xf32>, vector<128x128xf32>, vector<16x128xf32> -> vector<16x128xf32>
    %c0_9 = arith.constant 0 : index
    %c0_10 = arith.constant 0 : index
    %10 = vector.load %arg5[%c0_9, %c0_10] : memref<1x128xf32, #tpu.memory_space<vmem>>, vector<1x128xf32>
    %11 = vector.broadcast %10 : vector<1x128xf32> to vector<16x128xf32>
    %12 = arith.addf %9, %11 : vector<16x128xf32>
    %cst_11 = arith.constant 0.000000e+00 : f32
    %13 = vector.broadcast %cst_11 : f32 to vector<16x128xf32>
    %14 = arith.maximumf %12, %13 : vector<16x128xf32>
    %c0_12 = arith.constant 0 : index
    %c0_13 = arith.constant 0 : index
    %15 = vector.load %arg6[%c0_12, %c0_13] : memref<128x128xf32, #tpu.memory_space<vmem>>, vector<128x128xf32>
    %cst_14 = arith.constant dense<0.000000e+00> : vector<16x128xf32>
    %16 = tpu.matmul %14, %15, %cst_14 {dimension_numbers = #tpu.dot_dimension_numbers<[1], [0], [0], [1], [0, 0, 1, 1], [], []>} : vector<16x128xf32>, vector<128x128xf32>, vector<16x128xf32> -> vector<16x128xf32>
    %c0_15 = arith.constant 0 : index
    %c0_16 = arith.constant 0 : index
    %17 = vector.load %arg7[%c0_15, %c0_16] : memref<1x128xf32, #tpu.memory_space<vmem>>, vector<1x128xf32>
    %18 = vector.broadcast %17 : vector<1x128xf32> to vector<16x128xf32>
    %19 = arith.addf %16, %18 : vector<16x128xf32>
    %c0_17 = arith.constant 0 : index
    %c0_18 = arith.constant 0 : index
    %20 = vector.load %arg8[%c0_17, %c0_18] : memref<16x128xf32, #tpu.memory_space<vmem>>, vector<16x128xf32>
    tpu.vector_store %arg8[%c0_17, %c0_18], %19 {strides = array<i32>} : memref<16x128xf32, #tpu.memory_space<vmem>>, vector<16x128xf32>,
    return
  }
  func.func @transform_0(%arg0: i32) -> (i32, i32) {
    %c0_i32 = arith.constant 0 : i32
    %c0_i32_0 = arith.constant 0 : i32
    return %arg0, %c0_i32 : i32, i32
  }
  func.func @transform_1(%arg0: i32) -> (i32, i32) {
    %c0_i32 = arith.constant 0 : i32
    %c0_i32_0 = arith.constant 0 : i32
    %c0_i32_1 = arith.constant 0 : i32
    return %c0_i32, %c0_i32_0 : i32, i32
  }
  func.func @transform_2(%arg0: i32) -> (i32, i32) {
    %c0_i32 = arith.constant 0 : i32
    %c0_i32_0 = arith.constant 0 : i32
    %c0_i32_1 = arith.constant 0 : i32
    return %c0_i32, %c0_i32_0 : i32, i32
  }
  func.func @transform_3(%arg0: i32) -> (i32, i32) {
    %c0_i32 = arith.constant 0 : i32
    %c0_i32_0 = arith.constant 0 : i32
    %c0_i32_1 = arith.constant 0 : i32
    return %c0_i32, %c0_i32_0 : i32, i32
  }
  func.func @transform_4(%arg0: i32) -> (i32, i32) {
    %c0_i32 = arith.constant 0 : i32
    %c0_i32_0 = arith.constant 0 : i32
    %c0_i32_1 = arith.constant 0 : i32
    return %c0_i32, %c0_i32_0 : i32, i32
  }
  func.func @transform_5(%arg0: i32) -> (i32, i32) {
    %c0_i32 = arith.constant 0 : i32
    %c0_i32_0 = arith.constant 0 : i32
    %c0_i32_1 = arith.constant 0 : i32
    return %c0_i32, %c0_i32_0 : i32, i32
  }
  func.func @transform_6(%arg0: i32) -> (i32, i32) {
    %c0_i32 = arith.constant 0 : i32
    %c0_i32_0 = arith.constant 0 : i32
    %c0_i32_1 = arith.constant 0 : i32
    return %c0_i32, %c0_i32_0 : i32, i32
  }
  func.func @transform_7(%arg0: i32) -> (i32, i32) {
    %c0_i32 = arith.constant 0 : i32
    %c0_i32_0 = arith.constant 0 : i32
    return %arg0, %c0_i32 : i32, i32
  }
}

</mosaic_0001>

<bundles_post_ra>
// kernel: multicnn_forward.1
= control target key start
LH: loop header
LB: loop body
LE: loop exit
PB: predicated region body
PF: predicated region fallthrough
CT: control target
= control target key end

     0   :  { %s852_s1 = inlined_call_operand.vmem [shape: f32[256,128], index: 1, kind: input, shape index: {}]   ;;  %s853_s0 = inlined_call_operand.vmem [shape: f32[16,256], index: 0, kind: input, shape index: {}]   ;;  %s854_s3 = inlined_call_operand.vmem [shape: f32[128,128], index: 3, kind: input, shape index: {}]   ;;  %s855_s5 = inlined_call_operand.vmem [shape: f32[128,128], index: 5, kind: input, shape index: {}]   ;;  %s856_s2 = inlined_call_operand.vmem [shape: f32[1,128], index: 2, kind: input, shape index: {}]   ;;  %s857_s4 = inlined_call_operand.vmem [shape: f32[1,128], index: 4, kind: input, shape index: {}]   ;;  %s858_s6 = inlined_call_operand.vmem [shape: f32[1,128], index: 6, kind: input, shape index: {}]   ;;  %s859_s7 = inlined_call_operand.vmem [shape: f32[16,128], index: 7, kind: output, shape index: {}]  }
   0x1   :  { %v46_v0 = vld [vmem:[%s852_s1 + $0x80] sm:$0xff]  ;;  %v47_v1 = vld [vmem:[%s852_s1 + $0x88] sm:$0xff]  ;;  %v48_v5 = vld [vmem:[%s852_s1 + $0x90] sm:$0xff] }
   0x2   :  { %v30_v2 = vld [vmem:[%s852_s1] sm:$0xff]  ;;  %v497_v3 = vpack.c.bf16 %v47_v1, %v46_v0  ;;  %v31_v4 = vld [vmem:[%s852_s1 + $0x8] sm:$0xff]  ;;  %v49_v6 = vld [vmem:[%s852_s1 + $0x98] sm:$0xff] }
   0x3   :  { %v499_v7 = vpack.c.bf16 %v31_v4, %v30_v2  ;;  %v501_v8 = vpack.c.bf16 %v49_v6, %v48_v5  ;;  %v32_v9 = vld [vmem:[%s852_s1 + $0x10] sm:$0xff]  ;;  %v33_v10 = vld [vmem:[%s852_s1 + $0x18] sm:$0xff]  ;;  %v50_v11 = vld [vmem:[%s852_s1 + $0xa0] sm:$0xff] }
   0x4   :  { %498 = vmatprep.subr.bf16.mxu0 %v497_v3  ;;  %v51_v12 = vld [vmem:[%s852_s1 + $0xa8] sm:$0xff]  ;;  %v503_v13 = vpack.c.bf16 %v33_v10, %v32_v9  ;;  %v34_v15 = vld [vmem:[%s852_s1 + $0x20] sm:$0xff]  ;;  %v52_v17 = vld [vmem:[%s852_s1 + $0xb0] sm:$0xff] }
   0x5   :  { %500 = vmatpush3.bf16.msra.mxu0 %v499_v7  ;;  %v505_v14 = vpack.c.bf16 %v51_v12, %v50_v11  ;;  %v35_v16 = vld [vmem:[%s852_s1 + $0x28] sm:$0xff]  ;;  %v53_v18 = vld [vmem:[%s852_s1 + $0xb8] sm:$0xff]  ;;  %v36_v21 = vld [vmem:[%s852_s1 + $0x30] sm:$0xff] }
   0x6   :  { %502 = vmatprep.subr.bf16.mxu0 %v501_v8  ;;  %v507_v19 = vpack.c.bf16 %v35_v16, %v34_v15  ;;  %v509_v20 = vpack.c.bf16 %v53_v18, %v52_v17  ;;  %v37_v22 = vld [vmem:[%s852_s1 + $0x38] sm:$0xff]  ;;  %v54_v23 = vld [vmem:[%s852_s1 + $0xc0] sm:$0xff]  ;;  %v55_v24 = vld [vmem:[%s852_s1 + $0xc8] sm:$0xff] }
   0x7   :  { %v27_v25 = vld [vmem:[%s853_s0 + $0x8] sm:$0xff]  ;;  %v38_v26 = vld [vmem:[%s852_s1 + $0x40] sm:$0xff]  ;;  %v511_v27 = vpack.c.bf16 %v37_v22, %v36_v21  ;;  %v148_v30 = vld [vmem:[%s854_s3 + $0x10] sm:$0xff]  ;;  %v513_v31 = vpack.c.bf16 %v55_v24, %v54_v23 }
   0x8   :  { %133 = vmatprep.mubr.f32.mxu0 %v27_v25  ;;  %v146_v28 = vld [vmem:[%s854_s3] sm:$0xff]  ;;  %v147_v29 = vld [vmem:[%s854_s3 + $0x8] sm:$0xff]  ;;  %v56_v33 = vld [vmem:[%s852_s1 + $0xd0] sm:$0xff] }
   0x9   :  { %504 = vmatpush3.bf16.msra.mxu0 %v503_v13  ;;  %v39_v32 = vld [vmem:[%s852_s1 + $0x48] sm:$0xff]  ;;  %v529_v34 = vpack.c.bf16 %v147_v29, %v146_v28  ;;  %v149_v35 = vld [vmem:[%s854_s3 + $0x18] sm:$0xff]  ;;  %v150_v38 = vld [vmem:[%s854_s3 + $0x20] sm:$0xff] }
   0xa   :  { %506 = vmatprep.subr.bf16.mxu0 %v505_v14  ;;  %v57_v36 = vld [vmem:[%s852_s1 + $0xd8] sm:$0xff]  ;;  %v533_v37 = vpack.c.bf16 %v149_v35, %v148_v30  ;;  %v151_v39 = vld [vmem:[%s854_s3 + $0x28] sm:$0xff]  ;;  %v515_v40 = vpack.c.bf16 %v39_v32, %v38_v26  ;;  %v40_v42 = vld [vmem:[%s852_s1 + $0x50] sm:$0xff] }
   0xb   :  { %530 = vmatprep.subr.bf16.mxu1 %v529_v34  ;;  %v517_v41 = vpack.c.bf16 %v57_v36, %v56_v33  ;;  %v41_v43 = vld [vmem:[%s852_s1 + $0x58] sm:$0xff]  ;;  %v58_v44 = vld [vmem:[%s852_s1 + $0xe0] sm:$0xff]  ;;  %v537_v45 = vpack.c.bf16 %v151_v39, %v150_v38  ;;  %v59_v46 = vld [vmem:[%s852_s1 + $0xe8] sm:$0xff] }
   0xc   :  { %532 = vmatpush3.bf16.msra.mxu1 %v529_v34  ;;  %v152_v47 = vld [vmem:[%s854_s3 + $0x30] sm:$0xff]  ;;  %v153_v48 = vld [vmem:[%s854_s3 + $0x38] sm:$0xff]  ;;  %v519_v49 = vpack.c.bf16 %v41_v43, %v40_v42  ;;  %v521_v50 = vpack.c.bf16 %v59_v46, %v58_v44  ;;  %v42_v51 = vld [vmem:[%s852_s1 + $0x60] sm:$0xff] }
   0xd   :  { %508 = vmatpush3.bf16.msra.mxu0 %v507_v19  ;;  %534 = vmatprep.subr.bf16.mxu1 %v533_v37  ;;  %v43_v52 = vld [vmem:[%s852_s1 + $0x68] sm:$0xff]  ;;  %v60_v53 = vld [vmem:[%s852_s1 + $0xf0] sm:$0xff]  ;;  %v541_v54 = vpack.c.bf16 %v153_v48, %v152_v47  ;;  %v61_v55 = vld [vmem:[%s852_s1 + $0xf8] sm:$0xff] }
   0xe   :  { %510 = vmatprep.subr.bf16.mxu0 %v509_v20  ;;  %v154_v56 = vld [vmem:[%s854_s3 + $0x40] sm:$0xff]  ;;  %v155_v57 = vld [vmem:[%s854_s3 + $0x48] sm:$0xff]  ;;  %v523_v58 = vpack.c.bf16 %v43_v52, %v42_v51  ;;  %v525_v59 = vpack.c.bf16 %v61_v55, %v60_v53  ;;  %v44_v60 = vld [vmem:[%s852_s1 + $0x70] sm:$0xff] }
   0xf   :  { %v45_v61 = vld [vmem:[%s852_s1 + $0x78] sm:$0xff]  ;;  %v545_v62 = vpack.c.bf16 %v155_v57, %v154_v56  ;;  %v26_v0 = vld [vmem:[%s853_s0] sm:$0xff]  ;;  %v28_v2 = vld [vmem:[%s853_s0 + $0x10] sm:$0xff] }
  0x10   :  { %536 = vmatpush3.bf16.msra.mxu1 %v533_v37  ;;  %v527_v63 = vpack.c.bf16 %v45_v61, %v44_v60  ;;  %v29_v1 = vld [vmem:[%s853_s0 + $0x18] sm:$0xff]  ;;  %v156_v3 = vld [vmem:[%s854_s3 + $0x50] sm:$0xff]  ;;  %v158_v6 = vld [vmem:[%s854_s3 + $0x60] sm:$0xff] }
  0x11   :  { %512 = vmatpush3.bf16.msra.mxu0 %v511_v27  ;;  %538 = vmatprep.subr.bf16.mxu1 %v537_v45  ;;  %v157_v4 = vld [vmem:[%s854_s3 + $0x58] sm:$0xff]  ;;  %v159_v7 = vld [vmem:[%s854_s3 + $0x68] sm:$0xff]  ;;  %v160_v9 = vld [vmem:[%s854_s3 + $0x70] sm:$0xff] }
  0x12   :  { %514 = vmatprep.subr.bf16.mxu0 %v513_v31  ;;  %v549_v5 = vpack.c.bf16 %v157_v4, %v156_v3  ;;  %v553_v8 = vpack.c.bf16 %v159_v7, %v158_v6  ;;  %v161_v10 = vld [vmem:[%s854_s3 + $0x78] sm:$0xff]  ;;  %v246_v12 = vld [vmem:[%s855_s5] sm:$0xff]  ;;  %v247_v13 = vld [vmem:[%s855_s5 + $0x8] sm:$0xff] }
  0x13   :  { %v557_v11 = vpack.c.bf16 %v161_v10, %v160_v9  ;;  %v248_v14 = vld [vmem:[%s855_s5 + $0x10] sm:$0xff]  ;;  %v561_v15 = vpack.c.bf16 %v247_v13, %v246_v12  ;;  %v249_v16 = vld [vmem:[%s855_s5 + $0x18] sm:$0xff]  ;;  %v250_v18 = vld [vmem:[%s855_s5 + $0x20] sm:$0xff] }
  0x14   :  { %540 = vmatpush3.bf16.msra.mxu1 %v537_v45  ;;  %v565_v17 = vpack.c.bf16 %v249_v16, %v248_v14  ;;  %v251_v19 = vld [vmem:[%s855_s5 + $0x28] sm:$0xff]  ;;  %v252_v21 = vld [vmem:[%s855_s5 + $0x30] sm:$0xff]  ;;  %v253_v22 = vld [vmem:[%s855_s5 + $0x38] sm:$0xff] }
  0x15   :  { %516 = vmatpush3.bf16.msra.mxu0 %v515_v40  ;;  %542 = vmatprep.subr.bf16.mxu1 %v541_v54  ;;  %v569_v20 = vpack.c.bf16 %v251_v19, %v250_v18  ;;  %v573_v23 = vpack.c.bf16 %v253_v22, %v252_v21  ;;  %v254_v24 = vld [vmem:[%s855_s5 + $0x40] sm:$0xff]  ;;  %v255_v25 = vld [vmem:[%s855_s5 + $0x48] sm:$0xff]  ;;  %v256_v27 = vld [vmem:[%s855_s5 + $0x50] sm:$0xff] }
  0x16   :  { %518 = vmatprep.subr.bf16.mxu0 %v517_v41  ;;  %v577_v26 = vpack.c.bf16 %v255_v25, %v254_v24  ;;  %v257_v28 = vld [vmem:[%s855_s5 + $0x58] sm:$0xff]  ;;  %v258_v30 = vld [vmem:[%s855_s5 + $0x60] sm:$0xff]  ;;  %v259_v31 = vld [vmem:[%s855_s5 + $0x68] sm:$0xff] }
  0x17   :  { %v581_v29 = vpack.c.bf16 %v257_v28, %v256_v27  ;;  %v585_v32 = vpack.c.bf16 %v259_v31, %v258_v30  ;;  %v350_v35 = vld [vmem:[%s856_s2] ss:$0 sm:$0xff]  ;;  %v260_v44 = vld [vmem:[%s855_s5 + $0x70] sm:$0xff]  ;;  %v261_v45 = vld [vmem:[%s855_s5 + $0x78] sm:$0xff] }
  0x18   :  { %544 = vmatpush3.bf16.msra.mxu1 %v541_v54  ;;  %v589_v46 = vpack.c.bf16 %v261_v45, %v260_v44  ;;  %v351_v47 = vld [vmem:[%s857_s4] ss:$0 sm:$0xff] }
  0x19   :  { %520 = vmatpush3.bf16.msra.mxu0 %v519_v49  ;;  %546 = vmatprep.subr.bf16.mxu1 %v545_v62  ;;  %v352_v54 = vld [vmem:[%s858_s6] ss:$0 sm:$0xff] }
  0x1a   :  { %522 = vmatprep.subr.bf16.mxu0 %v521_v50 }
  0x1c   :  { %548 = vmatpush3.bf16.msra.mxu1 %v545_v62 }
  0x1d   :  { %524 = vmatpush3.bf16.msra.mxu0 %v523_v58  ;;  %550 = vmatprep.subr.bf16.mxu1 %v549_v5 }
  0x1e   :  { %526 = vmatprep.subr.bf16.mxu0 %v525_v59 }
  0x20   :  { %552 = vmatpush3.bf16.msra.mxu1 %v549_v5 }
  0x21   :  { %528 = vmatpush3.bf16.msra.mxu0 %v527_v63  ;;  %554 = vmatprep.subr.bf16.mxu1 %v553_v8 }
  0x22   :  { %562 = vmatprep.subr.bf16.mxu0 %v561_v15 }
  0x24   :  { %134 = vmatmul.mubr.f32.vlgmr.msra.gmra.mrb[0].mxu0 %v26_v0  ;;  %556 = vmatpush3.bf16.msra.mxu1 %v553_v8 }
  0x25   :  { %138 = vmatprep.mubr.f32.mxu0 %v29_v1  ;;  %558 = vmatprep.subr.bf16.mxu1 %v557_v11 }
  0x26   :  { %564 = vmatpush3.bf16.msra.mxu0 %v561_v15 }
  0x27   :  { %566 = vmatprep.subr.bf16.mxu0 %v565_v17 }
  0x28   :  { %139 = vmatmul.mubr.f32.gmra.mrb[2].mxu0 %v28_v2  ;;  %560 = vmatpush3.bf16.msra.mxu1 %v557_v11 }
  0x2a   :  { %568 = vmatpush3.bf16.msra.mxu0 %v565_v17 }
  0x2b   :  { %570 = vmatprep.subr.bf16.mxu0 %v569_v20 }
  0x2e   :  { %572 = vmatpush3.bf16.msra.mxu0 %v569_v20 }
  0x2f   :  { %574 = vmatprep.subr.bf16.mxu0 %v573_v23 }
  0x32   :  { %576 = vmatpush3.bf16.msra.mxu0 %v573_v23 }
  0x33   :  { %578 = vmatprep.subr.bf16.mxu0 %v577_v26 }
  0x36   :  { %580 = vmatpush3.bf16.msra.mxu0 %v577_v26 }
  0x37   :  { %582 = vmatprep.subr.bf16.mxu0 %v581_v29 }
  0x3a   :  { %584 = vmatpush3.bf16.msra.mxu0 %v581_v29 }
  0x3b   :  { %586 = vmatprep.subr.bf16.mxu0 %v585_v32 }
  0x3e   :  { %588 = vmatpush3.bf16.msra.mxu0 %v585_v32 }
  0x3f   :  { %590 = vmatprep.subr.bf16.mxu0 %v589_v46 }
  0x42   :  { %592 = vmatpush3.bf16.msra.mxu0 %v589_v46 }
  0xf7   :  { %v385_v33 = vpop.f32.mrb[0].mxu0 }
  0xf8   :  { %v386_v34 = vpop.f32.mrb[1].mxu0 }
  0xf9   :  { %v387_v36 = vadd.f32 %v386_v34, %v385_v33 }
  0xfb   :  { %v388_v37 = vpop.f32.mrb[2].mxu0  ;;  %v136_v38 = vadd.f32 %v387_v36, %v350_v35 }
  0xfc   :  { %v389_v39 = vpop.f32.mrb[3].mxu0 }
  0xfd   :  { %v390_v40 = vadd.f32 %v389_v39, %v388_v37  ;;  %v144_v41 = vmax.f32 %v136_v38, 0.0 }
  0xff   :  { %v141_v42 = vadd.f32 %v390_v40, %v350_v35  ;;  %459 = vmatprep.mubr.f32.mxu1 %v144_v41 }
 0x101   :  { %v145_v43 = vmax.f32 %v141_v42, 0.0 }
 0x103   :  { %460 = vmatmul.mubr.f32.vlgmr.msra.gmra.mrb[0].mxu1 %v145_v43 }
 0x1d6   :  { %v461_v48 = vpop.f32.mrb[0].mxu1 }
 0x1d7   :  { %v241_v49 = vadd.f32 %v461_v48, %v351_v47  ;;  %v235_v50 = vpop.f32.mrb[1].mxu1 }
 0x1d8   :  { %v236_v51 = vadd.f32 %v351_v47, %v235_v50 }
 0x1d9   :  { %v245_v53 = vmax.f32 %v241_v49, 0.0 }
 0x1da   :  { %v244_v52 = vmax.f32 %v236_v51, 0.0 }
 0x1dc   :  { %494 = vmatprep.mubr.f32.mxu0 %v244_v52 }
 0x1dd   :  { %495 = vmatmul.mubr.f32.vlgmr.msra.gmra.mrb[4].mxu0 %v245_v53 }
 0x2b0   :  { %v496_v55 = vpop.f32.mrb[4].mxu0 }
 0x2b1   :  { %v341_v56 = vadd.f32 %v496_v55, %v352_v54  ;;  %v335_v57 = vpop.f32.mrb[5].mxu0 }
 0x2b2   :  { %v336_v58 = vadd.f32 %v352_v54, %v335_v57 }
 0x2b3   :  { %345 = vst [vmem:[%s859_s7 + $0x8] sm:$0xff] %v341_v56 }
 0x2b4   :  { %344 = vst [vmem:[%s859_s7] sm:$0xff] %v336_v58 }

</bundles_post_ra>
